<compile_context>
chip_gen: v6e
topology: v6e:2x2x1
jax: 0.10.0
libtpu: 0.0.40
codegen_flags: <defaults>
</compile_context>

<pallas_src>
import jax
import jax.numpy as jnp
from jax.experimental import pallas as pl
from jax.experimental.pallas import tpu as pltpu


def _round_up(v, m):
    return ((v + m - 1) // m) * m


# ----------------------------------------------------------------------------
# Kernel
# ----------------------------------------------------------------------------
def _make_sage_kernel(fuse_head):
    """SAGEConv layer kernel. grid = (row_tiles, k_tiles), k is the neighbour
    contraction axis (reduction, last in the grid).

    acc (VMEM scratch, f32) layout: [:, :F] accumulates A @ x (mean
    aggregation) over k; [:, F:] parks the row tile's own features, so the
    projection at the last k step is a single fused
    [agg | x_self] @ [Wl ; Wr] matmul.
    """

    def kernel(a_ref, xk_ref, xi_ref, w_ref, b_ref, *rest):
        if fuse_head:
            wo_ref, bo_ref, out_ref, acc_ref = rest
        else:
            out_ref, acc_ref = rest

        k = pl.program_id(1)
        feat = xk_ref.shape[-1]
        rows = acc_ref.shape[0]

        @pl.when(k == 0)
        def _init():
            acc_ref[:, :feat] = jnp.zeros((rows, feat), jnp.float32)
            acc_ref[:, feat:] = xi_ref[...].astype(jnp.float32)

        # Streaming mean aggregation: bf16 operands on the MXU, f32 accumulate.
        acc_ref[:, :feat] += jnp.dot(a_ref[...], xk_ref[...],
                                     preferred_element_type=jnp.float32)

        @pl.when(k == pl.num_programs(1) - 1)
        def _finalize():
            h = jnp.dot(acc_ref[...].astype(jnp.bfloat16), w_ref[...],
                        preferred_element_type=jnp.float32) + b_ref[...]
            h = jnp.maximum(h, 0.0)  # ReLU, f32 on the VPU
            if fuse_head:
                # Linear head + 2-class softmax taken at class 1:
                #   softmax(z)[:, 1] == sigmoid(z1 - z0)
                # wo_ref holds (wo[:,1]-wo[:,0]) replicated over 128 lanes, so
                # the (rows, 128) store below is lane-dense.
                d = (jnp.dot(h, wo_ref[...], preferred_element_type=jnp.float32)
                     + bo_ref[...])
                out_ref[...] = pl.reciprocal(1.0 + jnp.exp(-d), approx=True)
            else:
                out_ref[...] = h.astype(out_ref.dtype)

    return kernel


# ----------------------------------------------------------------------------
# Per-layer pallas_call wrapper
# ----------------------------------------------------------------------------
def _sage_layer(a, x, w_cat, b, head=None, *, block_rows, block_k,
                vmem_limit_bytes=48 * 1024 * 1024):
    n_pad = a.shape[0]
    feat = x.shape[1]
    hidden = w_cat.shape[1]
    grid = (n_pad // block_rows, n_pad // block_k)

    a_spec = pl.BlockSpec((block_rows, block_k), lambda i, k: (i, k))
    xk_spec = pl.BlockSpec((block_k, feat), lambda i, k: (k, 0))      # neighbour rows
    xi_spec = pl.BlockSpec((block_rows, feat), lambda i, k: (i, 0))   # self rows

    # Weights / biases are tiny: constant index_map -> DMA'd once, resident.
    def resident(arr):
        return pl.BlockSpec(arr.shape, lambda i, k: (0, 0))

    in_specs = [a_spec, xk_spec, xi_spec, resident(w_cat), resident(b)]
    inputs = [a, x, x, w_cat, b]

    if head is None:
        out_shape = jax.ShapeDtypeStruct((n_pad, hidden), jnp.bfloat16)
        out_spec = pl.BlockSpec((block_rows, hidden), lambda i, k: (i, 0))
    else:
        wo_head, bo_head = head
        in_specs += [resident(wo_head), resident(bo_head)]
        inputs += [wo_head, bo_head]
        out_shape = jax.ShapeDtypeStruct((n_pad, wo_head.shape[1]), jnp.float32)
        out_spec = pl.BlockSpec((block_rows, wo_head.shape[1]), lambda i, k: (i, 0))

    return pl.pallas_call(
        _make_sage_kernel(fuse_head=head is not None),
        out_shape=out_shape,
        grid_spec=pltpu.PrefetchScalarGridSpec(
            num_scalar_prefetch=0,
            grid=grid,
            in_specs=in_specs,
            out_specs=out_spec,
            scratch_shapes=[pltpu.VMEM((block_rows, 2 * feat), jnp.float32)]),
        compiler_params=pltpu.CompilerParams(
            # Row tiles are independent -> "parallel" (v7x: shard over 2 TCs);
            # k is the neighbour contraction -> "arbitrary" (accumulator axis).
            dimension_semantics=("parallel", "arbitrary"),
            vmem_limit_bytes=vmem_limit_bytes),
    )(*inputs)


# ----------------------------------------------------------------------------
# Glue (plain JAX)
# ----------------------------------------------------------------------------
def build_norm_adjacency(edge_index, num_nodes):
    """Dense row-normalized adjacency: A[i, j] = #edges(j->i) / in_degree(i)
    (zero row if in-degree 0), matching PyG SAGEConv mean aggregation.

    Plain-JAX glue (dynamic scatter of the edge list).
    """
    # TODO(synk): for production graph sizes replace the dense O(N^2) A and the
    # dense A @ x with a block-sparse / CSR formulation driven by
    # PrefetchScalarGridSpec scalar prefetch (skip empty k tiles).
    src, dst = edge_index[0], edge_index[1]
    counts = jnp.zeros((num_nodes, num_nodes), jnp.float32).at[dst, src].add(1.0)
    deg = jnp.sum(counts, axis=1, keepdims=True)
    return jnp.where(deg > 0, counts / jnp.maximum(deg, 1.0), 0.0)


def _prep_params(params, f_in_pad, h_pad):
    assert params["wo"].shape[1] == 2, "fused sigmoid head assumes classes == 2"

    def pad2(a, rows, cols):
        return jnp.pad(a, ((0, rows - a.shape[0]), (0, cols - a.shape[1])))

    # Fused [Wl ; Wr] weights (bf16 MXU operands), f32 biases.
    w1 = jnp.concatenate([pad2(params["wl1"], f_in_pad, h_pad),
                          pad2(params["wr1"], f_in_pad, h_pad)],
                         axis=0).astype(jnp.bfloat16)
    b1 = pad2(params["bl1"], 1, h_pad).astype(jnp.float32)
    w2 = jnp.concatenate([pad2(params["wl2"], h_pad, h_pad),
                          pad2(params["wr2"], h_pad, h_pad)],
                         axis=0).astype(jnp.bfloat16)
    b2 = pad2(params["bl2"], 1, h_pad).astype(jnp.float32)

    # 2-class head: softmax(logits)[:, 1] == sigmoid(logit1 - logit0).
    # Replicate the class-difference column across 128 lanes so the kernel's
    # final probability store is lane-dense.
    wo_diff = params["wo"][:, 1:2] - params["wo"][:, 0:1]          # (hidden, 1)
    wo_head = jnp.tile(pad2(wo_diff, h_pad, 1), (1, 128)).astype(jnp.float32)
    bo_head = jnp.full((1, 128), params["bo"][0, 1] - params["bo"][0, 0],
                       jnp.float32)
    return w1, b1, w2, b2, wo_head, bo_head


def fraud_graph_sage(x, edge_index, params, *, block_rows=128, block_k=128):
    """Forward pass: softmax(out(sage2(relu(sage1(x)))), -1)[:, 1], shape (N,).

    Tile-size note: the bf16 A tile costs block_rows*block_k*2 bytes and is
    double-buffered; at production N raise block_k toward ~512 on v5e/v6e
    (128 MiB VMEM) but only ~256 on v7x (64 MiB VMEM per TensorCore).
    """
    n, in_dim = x.shape
    hidden = params["wl1"].shape[1]

    assert max(block_rows, block_k) % min(block_rows, block_k) == 0
    n_pad = _round_up(n, max(block_rows, block_k))
    f_in_pad = _round_up(in_dim, 128)   # lane-pad tiny feature dims
    h_pad = _round_up(hidden, 128)

    a = build_norm_adjacency(edge_index, n)
    a = jnp.pad(a, ((0, n_pad - n), (0, n_pad - n))).astype(jnp.bfloat16)
    xp = jnp.pad(x, ((0, n_pad - n), (0, f_in_pad - in_dim))).astype(jnp.bfloat16)

    w1, b1, w2, b2, wo_head, bo_head = _prep_params(params, f_in_pad, h_pad)

    h1 = _sage_layer(a, xp, w1, b1, block_rows=block_rows, block_k=block_k)
    p = _sage_layer(a, h1, w2, b2, head=(wo_head, bo_head),
                    block_rows=block_rows, block_k=block_k)
    # lane-dense (N_pad, 128) slab -> class-1 probability per real node
    return p[:n, 0]


# ----------------------------------------------------------------------------
# Params + pure-JAX reference
# ----------------------------------------------------------------------------
def init_params(key, in_dim, hidden, classes=2):
    ks = jax.random.split(key, 8)

    def u(k, shape, fan_in):
        bound = 1.0 / jnp.sqrt(jnp.float32(fan_in))
        return jax.random.uniform(k, shape, jnp.float32, -bound, bound)

    # Weights stored as (fan_in, fan_out) so the kernel does x @ W.
    return {
        "wl1": u(ks[0], (in_dim, hidden), in_dim),
        "bl1": u(ks[1], (1, hidden), in_dim),
        "wr1": u(ks[2], (in_dim, hidden), in_dim),
        "wl2": u(ks[3], (hidden, hidden), hidden),
        "bl2": u(ks[4], (1, hidden), hidden),
        "wr2": u(ks[5], (hidden, hidden), hidden),
        "wo":  u(ks[6], (hidden, classes), hidden),
        "bo":  u(ks[7], (1, classes), hidden),
    }


def reference(x, edge_index, params):
    a = build_norm_adjacency(edge_index, x.shape[0])
    h1 = jnp.maximum(a @ x @ params["wl1"] + params["bl1"] + x @ params["wr1"], 0.0)
    h2 = jnp.maximum(a @ h1 @ params["wl2"] + params["bl2"] + h1 @ params["wr2"], 0.0)
    logits = h2 @ params["wo"] + params["bo"]
    return jax.nn.softmax(logits, axis=-1)[:, 1]


if __name__ == "__main__":
    key = jax.random.PRNGKey(0)
    k_x, k_e, k_p = jax.random.split(key, 3)

    # Small but non-trivial: N=200 pads to 256 -> a real 2x2 (rows x k) grid.
    N, IN_DIM, HIDDEN, E = 200, 16, 32, 800
    x = jax.random.normal(k_x, (N, IN_DIM), jnp.float32)
    edge_index = jax.random.randint(k_e, (2, E), 0, N, dtype=jnp.int32)
    params = init_params(k_p, IN_DIM, HIDDEN, classes=2)

    out = jax.block_until_ready(fraud_graph_sage(x, edge_index, params))
    ref = reference(x, edge_index, params)

    assert out.shape == (N,)
    assert bool(jnp.all(jnp.isfinite(out)))
    # bf16 MXU operands + approx reciprocal -> relaxed tolerance vs f32 reference.
    assert jnp.allclose(out, ref, atol=3e-2), float(jnp.max(jnp.abs(out - ref)))
    print("KERNEL_OK")
</pallas_src>

<mosaic_0001>
module attributes {stable_mosaic.version = 11 : i64} {
  func.func @kernel(%arg0: i32, %arg1: i32, %arg2: memref<128x128xbf16, #tpu.memory_space<vmem>>, %arg3: memref<128x128xbf16, #tpu.memory_space<vmem>>, %arg4: memref<128x128xbf16, #tpu.memory_space<vmem>>, %arg5: memref<256x128xbf16, #tpu.memory_space<vmem>>, %arg6: memref<1x128xf32, #tpu.memory_space<vmem>>, %arg7: memref<128x128xbf16, #tpu.memory_space<vmem>>, %arg8: memref<128x256xf32, #tpu.memory_space<vmem>>) attributes {dimension_semantics = [#tpu.dimension_semantics<parallel>, #tpu.dimension_semantics<arbitrary>], iteration_bounds = array<i64: 2, 2>, scalar_prefetch = 0 : i64, scratch_operands = 1 : i64, tpu.core_type = #tpu.core_type<tc>, window_params = [{transform_indices = @transform_0, window_bounds = array<i64: 128, 128>}, {transform_indices = @transform_1, window_bounds = array<i64: 128, 128>}, {transform_indices = @transform_2, window_bounds = array<i64: 128, 128>}, {pipeline_mode = #tpu.pipeline_mode<synchronous>, transform_indices = @transform_3, window_bounds = array<i64: 256, 128>}, {pipeline_mode = #tpu.pipeline_mode<synchronous>, transform_indices = @transform_4, window_bounds = array<i64: 1, 128>}, {transform_indices = @transform_5, window_bounds = array<i64: 128, 128>}]} {
    %c0_i32 = arith.constant 0 : i32
    %0 = arith.cmpi eq, %arg1, %c0_i32 : i32
    %1 = arith.extui %0 : i1 to i32
    %c0_i32_0 = arith.constant 0 : i32
    %2 = arith.cmpi ne, %1, %c0_i32_0 : i32
    scf.if %2 {
      %cst_9 = arith.constant 0.000000e+00 : f32
      %12 = vector.broadcast %cst_9 : f32 to vector<128x128xf32>
      %c0_10 = arith.constant 0 : index
      %c0_11 = arith.constant 0 : index
      %13 = vector.load %arg8[%c0_10, %c0_11] : memref<128x256xf32, #tpu.memory_space<vmem>>, vector<128x128xf32>
      tpu.vector_store %arg8[%c0_10, %c0_11], %12 {strides = array<i32>} : memref<128x256xf32, #tpu.memory_space<vmem>>, vector<128x128xf32>,
      %c0_12 = arith.constant 0 : index
      %c0_13 = arith.constant 0 : index
      %14 = vector.load %arg4[%c0_12, %c0_13] : memref<128x128xbf16, #tpu.memory_space<vmem>>, vector<128x128xbf16>
      %15 = arith.extf %14 : vector<128x128xbf16> to vector<128x128xf32>
      %c0_14 = arith.constant 0 : index
      %c128 = arith.constant 128 : index
      %16 = vector.load %arg8[%c0_14, %c128] : memref<128x256xf32, #tpu.memory_space<vmem>>, vector<128x128xf32>
      tpu.vector_store %arg8[%c0_14, %c128], %15 {strides = array<i32>} : memref<128x256xf32, #tpu.memory_space<vmem>>, vector<128x128xf32>,
    } else {
    }
    %c0 = arith.constant 0 : index
    %c0_1 = arith.constant 0 : index
    %3 = vector.load %arg8[%c0, %c0_1] : memref<128x256xf32, #tpu.memory_space<vmem>>, vector<128x128xf32>
    %c0_2 = arith.constant 0 : index
    %c0_3 = arith.constant 0 : index
    %4 = vector.load %arg2[%c0_2, %c0_3] : memref<128x128xbf16, #tpu.memory_space<vmem>>, vector<128x128xbf16>
    %c0_4 = arith.constant 0 : index
    %c0_5 = arith.constant 0 : index
    %5 = vector.load %arg3[%c0_4, %c0_5] : memref<128x128xbf16, #tpu.memory_space<vmem>>, vector<128x128xbf16>
    %cst = arith.constant dense<0.000000e+00> : vector<128x128xf32>
    %6 = tpu.matmul %4, %5, %cst {dimension_numbers = #tpu.dot_dimension_numbers<[1], [0], [0], [1], [0, 0, 1, 1], [], []>} : vector<128x128xbf16>, vector<128x128xbf16>, vector<128x128xf32> -> vector<128x128xf32>
    %7 = arith.addf %3, %6 : vector<128x128xf32>
    %c0_6 = arith.constant 0 : index
    %c0_7 = arith.constant 0 : index
    %8 = vector.load %arg8[%c0_6, %c0_7] : memref<128x256xf32, #tpu.memory_space<vmem>>, vector<128x128xf32>
    tpu.vector_store %arg8[%c0_6, %c0_7], %7 {strides = array<i32>} : memref<128x256xf32, #tpu.memory_space<vmem>>, vector<128x128xf32>,
    %c1_i32 = arith.constant 1 : i32
    %9 = arith.cmpi eq, %arg1, %c1_i32 : i32
    %10 = arith.extui %9 : i1 to i32
    %c0_i32_8 = arith.constant 0 : i32
    %11 = arith.cmpi ne, %10, %c0_i32_8 : i32
    scf.if %11 {
      %c0_9 = arith.constant 0 : index
      %c0_10 = arith.constant 0 : index
      %12 = vector.load %arg8[%c0_9, %c0_10] : memref<128x256xf32, #tpu.memory_space<vmem>>, vector<128x256xf32>
      %13 = arith.truncf %12 : vector<128x256xf32> to vector<128x256xbf16>
      %c0_11 = arith.constant 0 : index
      %c0_12 = arith.constant 0 : index
      %14 = vector.load %arg5[%c0_11, %c0_12] : memref<256x128xbf16, #tpu.memory_space<vmem>>, vector<256x128xbf16>
      %cst_13 = arith.constant dense<0.000000e+00> : vector<128x128xf32>
      %15 = tpu.matmul %13, %14, %cst_13 {dimension_numbers = #tpu.dot_dimension_numbers<[1], [0], [0], [1], [0, 0, 1, 1], [], []>} : vector<128x256xbf16>, vector<256x128xbf16>, vector<128x128xf32> -> vector<128x128xf32>
      %c0_14 = arith.constant 0 : index
      %c0_15 = arith.constant 0 : index
      %16 = vector.load %arg6[%c0_14, %c0_15] : memref<1x128xf32, #tpu.memory_space<vmem>>, vector<1x128xf32>
      %17 = vector.broadcast %16 : vector<1x128xf32> to vector<128x128xf32>
      %18 = arith.addf %15, %17 : vector<128x128xf32>
      %cst_16 = arith.constant 0.000000e+00 : f32
      %19 = vector.broadcast %cst_16 : f32 to vector<128x128xf32>
      %20 = arith.maximumf %18, %19 : vector<128x128xf32>
      %21 = arith.truncf %20 : vector<128x128xf32> to vector<128x128xbf16>
      %c0_17 = arith.constant 0 : index
      %c0_18 = arith.constant 0 : index
      %22 = vector.load %arg7[%c0_17, %c0_18] : memref<128x128xbf16, #tpu.memory_space<vmem>>, vector<128x128xbf16>
      tpu.vector_store %arg7[%c0_17, %c0_18], %21 {strides = array<i32>} : memref<128x128xbf16, #tpu.memory_space<vmem>>, vector<128x128xbf16>,
    } else {
    }
    return
  }
  func.func @transform_0(%arg0: i32, %arg1: i32) -> (i32, i32) {
    %c0_i32 = arith.constant 0 : i32
    return %arg0, %arg1 : i32, i32
  }
  func.func @transform_1(%arg0: i32, %arg1: i32) -> (i32, i32) {
    %c0_i32 = arith.constant 0 : i32
    %c0_i32_0 = arith.constant 0 : i32
    return %arg1, %c0_i32 : i32, i32
  }
  func.func @transform_2(%arg0: i32, %arg1: i32) -> (i32, i32) {
    %c0_i32 = arith.constant 0 : i32
    %c0_i32_0 = arith.constant 0 : i32
    return %arg0, %c0_i32 : i32, i32
  }
  func.func @transform_3(%arg0: i32, %arg1: i32) -> (i32, i32) {
    %c0_i32 = arith.constant 0 : i32
    %c0_i32_0 = arith.constant 0 : i32
    %c0_i32_1 = arith.constant 0 : i32
    return %c0_i32, %c0_i32_0 : i32, i32
  }
  func.func @transform_4(%arg0: i32, %arg1: i32) -> (i32, i32) {
    %c0_i32 = arith.constant 0 : i32
    %c0_i32_0 = arith.constant 0 : i32
    %c0_i32_1 = arith.constant 0 : i32
    return %c0_i32, %c0_i32_0 : i32, i32
  }
  func.func @transform_5(%arg0: i32, %arg1: i32) -> (i32, i32) {
    %c0_i32 = arith.constant 0 : i32
    %c0_i32_0 = arith.constant 0 : i32
    return %arg0, %c0_i32 : i32, i32
  }
}

</mosaic_0001>

<bundles_post_ra>
// kernel: tpu_custom_call.1
= control target key start
LH: loop header
LB: loop body
LE: loop exit
PB: predicated region body
PF: predicated region fallthrough
CT: control target
= control target key end

     0   :  { %s2470_s0 = inlined_call_operand.hbm [shape: bf16[256,256], index: 0, kind: input, shape index: {}]   ;;  %s2471_s1 = inlined_call_operand.hbm [shape: bf16[256,128], index: 1, kind: input, shape index: {}]   ;;  %s2472_s2 = inlined_call_operand.hbm [shape: bf16[256,128], index: 2, kind: input, shape index: {}]   ;;  %s2473_s3 = inlined_call_operand.hbm [shape: bf16[256,128], index: 3, kind: input, shape index: {}]   ;;  %s2474_s4 = inlined_call_operand.vmem [shape: f32[1,128], index: 4, kind: input, shape index: {}]   ;;  %s2475_s5 = inlined_call_operand.hbm [shape: bf16[256,128], index: 5, kind: output, shape index: {}]  }
   0x1   :  { %2492 = sst [smem:[#allocation25_spill]] %s2470_s0 }
   0x2   :  { %2493 = sst [smem:[#allocation26_spill]] %s2471_s1 }
   0x3   :  { %2494 = sst [smem:[#allocation27_spill]] %s2473_s3 }
   0x4   :  { %2495 = sst [smem:[#allocation28_spill]] %s2474_s4 }
   0x5   :  { %2496 = sst [smem:[#allocation29_spill]] %s2475_s5 }
   0x6   :  { %10 = vsyncpa [#allocation4], 0 }
   0x7   :  { %12 = vsyncpa [#allocation4 + $0x1], 0 }
   0x8   :  { %13 = vsyncpa [#allocation7], 0 }
   0x9   :  { %15 = vsyncpa [#allocation7 + $0x1], 0 }
   0xa   :  { %16 = vsyncpa [#allocation10], 0 }
   0xb   :  { %17 = vsyncpa [#allocation5], 0 }
   0xc   :  { %19 = vsyncpa [#allocation5 + $0x1], 0  ;;  %s2051_s18 = smov 0   ;;  %s2053_s19 = smov 0  }
   0xd   :  { %s2055_s20 = smov 0   ;;  %s2057_s21 = smov 0  }
   0xe   :  { %s2059_s22 = smov 0   ;;  %s2061_s23 = smov 0  }
   0xf   :  { %s2063_s24 = smov 0   ;;  %s2065_s25 = smov 0  }
  0x10   :  { %s2067_s26 = smov 0   ;;  %s2069_s27 = smov 0  }
  0x11   :  { %s2071_s28 = smov 0   ;;  %s2073_s29 = smov 0  }
  0x12   :  { %s2075_s30 = smov 0   ;;  %s2077_s6 = smov 0  }
  0x13 LB: > { %2497 = sst [smem:[#allocation17_spill]] %s1976_s23  ;;  %s34_s7 = sadd.s32 1, %s2000_s29  ;;  %s2008_s6 = sphi %s2077_s6, %s25_s6   ;;  %s2004_s30 = sphi %s2075_s30, %s2543_s30   ;;  %s2000_s29 = sphi %s2073_s29, %s2554_s29   ;;  %s1996_s28 = sphi %s2071_s28, %s2553_s28   ;;  %s1992_s27 = sphi %s2069_s27, %s2552_s27   ;;  %s1988_s26 = sphi %s2067_s26, %s2551_s26   ;;  %s1984_s25 = sphi %s2065_s25, %s2550_s25   ;;  %s1980_s24 = sphi %s2063_s24, %s2549_s24   ;;  %s1976_s23 = sphi %s2061_s23, %s2540_s23   ;;  %s1972_s22 = sphi %s2059_s22, %s2548_s22   ;;  %s1968_s21 = sphi %s2057_s21, %s2547_s21   ;;  %s1964_s20 = sphi %s2055_s20, %s2546_s20   ;;  %s1960_s19 = sphi %s2053_s19, %s2545_s19   ;;  %s1956_s18 = sphi %s2051_s18, %s2544_s18  }
  0x14   : > { %2498 = sst [smem:[#allocation18_spill]] %s1992_s27  ;;  %s37_s8 = sadd.s32 1, %s2004_s30 }
  0x15   : > { %2499 = sst [smem:[#allocation19_spill]] %s1996_s28  ;;  %p35_p0 = scmp.ge.s32.totalorder %s34_s7, 2 }
  0x16   : > { %2500 = sst [smem:[#allocation20_spill]] %s2004_s30  ;;  %p2480_p1 = scmp.eq.s32.totalorder %s2008_s6, 0 }
  0x17   : > { %s72_s9 = sadd.s32 1, %s1976_s23  ;;  %p79_p2 = scmp.ne.s32.totalorder %s1976_s23, %s1972_s22 }
  0x18   : > { %s2556_s7 = smov (%p35_p0, %s34_s7), 0  ;;  %s2558_s8 = smov (!%p35_p0, %s37_s8), %s2004_s30 }
  0x19   : > { %2501 = sst [smem:[#allocation21_spill]] %s2556_s7  ;;  %s42_s10 = ssub.s32 %s2000_s29, %s2556_s7 }
  0x1a   : > { %p2134_p3 = por %p79_p2, %p2480_p1  ;;  %p39_p4 = scmp.ge.s32.totalorder %s2558_s8, 2 }
  0x1b   : > { %p70_p5 = scmp.eq.s32.totalorder %s42_s10, 0  ;;  %p85_p6 = scmp.ne.s32.totalorder %s1972_s22, %s1968_s21 }
  0x1c   : > { %s2560_s8 = smov (%p39_p4, %s2558_s8), 0  ;;  %p2479_p9 = scmp.lt.s32.totalorder %s2008_s6, 4 }
  0x1d   : > { %2503 = sst [smem:[#allocation22_spill]] %s2560_s8  ;;  %s2147_s13 = ssub.s32 %s2004_s30, %s2560_s8 }
  0x1e   : > { %s2143_s12 = scalar_select %p70_p5, %s1976_s23, %s72_s9  }
  0x1f   : > { %s43_s14 = sor.u32 %s42_s10, %s2147_s13  ;;  %s242_s16 = sand.u32 1, %s2008_s6  }
  0x20   : > { %2504 = sst [smem:[#allocation23_spill]] %s2143_s12  ;;  %p2151_p8 = scmp.eq.s32.totalorder %s43_s14, 0 }
  0x21   : > { %s244_s17 = sand.u32 1, %s1976_s23   ;;  %s1308_s5 = sshll.u32 %s2000_s29, 10 }
  0x22   : > { %s1239_s7 = sshll.u32 %s244_s17, 6  ;;  %s2506_s1 = sld [smem:[#allocation26_spill]] }
  0x23   : > { %s246_s12 = scalar_lea.vmem [#allocation6], %s1239_s7  ;;  %p2166_p10 = pnand %p2479_p9, %p2134_p3 }
  0x24   : > { %s253_s8 = sshll.u32 %s246_s12, 4  ;;  %s2170_s14 = scalar_lea.sflag [#allocation7], %s242_s16  ;;  %s254_s8 = int_to_ptr.vmem [resolvable:$true] %s253_s8 }
  0x25   : > { %p1744_p11 = pneg %p2166_p10  ;;  %s1755_s17 = scalar_lea.vmem %s254_s8, 1024 }
  0x26   : > { %p1756_p12 = scmp.ne.s32.totalorder %s254_s8, %s1755_s17  ;;  %s2010_s4 = smov [#allocation6]  }
  0x28   : > { %s252_s9 = scalar_lea.hbm %s2506_s1, %s1308_s5  ;;  %p1758_p13 = pnand %p1756_p12, %p1744_p11 }
  0x29   : > { %s1760_s5 = sshll.u32 %s2010_s4, 4  ;;  %s1761_s5 = int_to_ptr.vmem [resolvable:$false] %s1760_s5 }
  0x2a   : > { %p1759_p0 = pneg %p1758_p13  ;;  %s1762_s28 = scalar_lea.vmem %s1761_s5, 2048 }
  0x2b   : > { %p1763_p2 = scmp.lt.s32.totalorder %s254_s8, %s1761_s5  ;;  %p1764_p4 = scmp.lt.s32.totalorder %s1762_s28, %s1755_s17 }
  0x2d   : > { %p1765_p3 = por %p1764_p4, %p1763_p2 }
  0x2f   : > { %p1766_p5 = pnand %p1765_p3, %p1759_p0 }
  0x31   : > { %1769 = shalt.err (!%p1766_p5)
}
  0x32   : > { %s2485_s7 = smov 64   ;;  %s2487_s11 = smov 4  }
  0x33   : > { %1579 = dma.hbm_to_vmem [thread:$0]  (!%p2166_p10), %s252_s9, 1024, %s254_s8, %s2170_s14, %s2485_s7, %s2485_s7, %s2487_s11  }
  0x34   : > { %s2181_s12 = sadd.s32 4294967295, %s2008_s6   ;;  %p1232_p11 = scmp.ge.s32.totalorder %s2008_s6, 1 }
  0x35   : > { %p2490_p12 = scmp.eq.s32.totalorder %s2181_s12, 0  ;;  %p190_p0 = scmp.lt.s32.totalorder %s2008_s6, 5 }
  0x36   : > { %s2013_s8 = smov [#allocation9]   ;;  %s46_s17 = sadd.s32 1, %s1988_s26 }
  0x37   : > { %p2192_p2 = por %p85_p6, %p2490_p12  ;;  %p2196_p4 = pnand %p1232_p11, %p190_p0 }
  0x38   : > { %s202_s9 = sshll.u32 %s2013_s8, 4  ;;  %p53_p5 = scmp.ne.s32.totalorder %s1988_s26, %s1984_s25  ;;  %s203_s9 = int_to_ptr.vmem [resolvable:$true] %s202_s9 }
  0x39   : > { %s2508_s16 = scalar_select %p2192_p2, 1, 0 }
  0x3a   : > { %p1569_p10 = pneg %p2196_p4  ;;  %s1781_s21 = scalar_lea.vmem %s203_s9, 2048 }
  0x3b   : > { %2509 = sst [smem:[#allocation24_spill]] %s2508_s16  ;;  %p1782_p6 = scmp.ne.s32.totalorder %s203_s9, %s1781_s21 }
  0x3c   : > { %p1570_p3 = pnand %p1569_p10, %p2490_p12  ;;  %p1789_p1 = scmp.lt.s32.totalorder %s203_s9, %s203_s9 }
  0x3d   : > { %p1790_p11 = scmp.lt.s32.totalorder %s1781_s21, %s1781_s21 }
  0x3e   : > { %p1772_p13 = pneg %p1570_p3 }
  0x3f   : > { %p1791_p0 = por %p1790_p11, %p1789_p1 }
  0x40   : > { %p1784_p7 = pnand %p1782_p6, %p1772_p13 }
  0x42   : > { %p1785_p9 = pneg %p1784_p7 }
  0x44   : > { %p1792_p2 = pnand %p1791_p0, %p1785_p9 }
  0x46   : > { %1795 = shalt.err (!%p1792_p2)
}
  0x47   : > { %s2511_s3 = sld [smem:[#allocation27_spill]]  ;;  %p2512_p1 = scmp.eq.s32.totalorder %s2008_s6, 0 }
  0x48   : > { %s2216_s28 = scalar_select %p2151_p8, %s1988_s26, %s46_s17  }
  0x49   : > { %p55_p7 = por %p2512_p1, %p53_p5  ;;  %p59_p9 = scmp.ne.s32.totalorder %s1984_s25, %s1980_s24 }
  0x4a   : > { %s219_s8 = sand.u32 1, %s1988_s26   ;;  %s1307_s21 = sshll.u32 %s2004_s30, 5 }
  0x4b   : > { %p2229_p13 = por %p2490_p12, %p59_p9  ;;  %s1235_s5 = sshll.u32 %s219_s8, 6 }
  0x4c   : > { %s229_s1 = sadd.s32 %s2000_s29, %s1307_s21  ;;  %s2514_s0 = sld [smem:[#allocation25_spill]] }
  0x4d   : > { %1572 = dma.hbm_to_vmem [thread:$0]  (!%p1570_p3), %s2511_s3, 2048, %s203_s9, [#allocation10], %s2485_s7, %s2485_s7, %s2487_s11  }
  0x4e   : > { %s1238_s23 = sshll.u32 %s229_s1, 6  ;;  %s223_s9 = scalar_lea.vmem [#allocation3], %s1235_s5 }
  0x4f   : > { %s232_s17 = sshll.u32 %s223_s9, 4  ;;  %p2515_p8 = scmp.lt.s32.totalorder %s2008_s6, 4  ;;  %s233_s17 = int_to_ptr.vmem [resolvable:$true] %s232_s17 }
  0x50   : > { %s220_s7 = scalar_lea.sflag [#allocation4], %s219_s8  ;;  %s1809_s11 = scalar_lea.vmem %s233_s17, 1024 }
  0x51   : > { %p2239_p2 = pnand %p2515_p8, %p55_p7  ;;  %p1810_p3 = scmp.ne.s32.totalorder %s233_s17, %s1809_s11 }
  0x52   : > { %s231_s15 = scalar_lea.hbm %s2514_s0, %s1238_s23  ;;  %s2014_s1 = smov [#allocation3]  }
  0x53   : > { %p1798_p10 = pneg %p2239_p2  ;;  %s1814_s21 = sshll.u32 %s2014_s1, 4  ;;  %s1815_s21 = int_to_ptr.vmem [resolvable:$false] %s1814_s21 }
  0x54   : > { %s1816_s23 = scalar_lea.vmem %s1815_s21, 2048  ;;  %p1817_p11 = scmp.lt.s32.totalorder %s233_s17, %s1815_s21 }
  0x55   : > { %p1812_p5 = pnand %p1810_p3, %p1798_p10  ;;  %p1818_p0 = scmp.lt.s32.totalorder %s1816_s23, %s1809_s11 }
  0x57   : > { %p1813_p6 = pneg %p1812_p5  ;;  %p1819_p1 = por %p1818_p0, %p1817_p11 }
  0x59   : > { %p1820_p9 = pnand %p1819_p1, %p1813_p6 }
  0x5b   : > { %1823 = shalt.err (!%p1820_p9)
}
  0x5c   : > { %s2015_s27 = smov 128   ;;  %s2517_s16 = smov 4  }
  0x5d   : > { %s2518_s8 = smov 64   ;;  %s1231_s11 = sadd.s32 4294967294, %s2008_s6  }
  0x5e   : > { %1576 = dma.hbm_to_vmem [thread:$0]  (!%p2239_p2), %s231_s15, 1024, %s233_s17, %s220_s7, %s2015_s27, %s2518_s8, %s2517_s16  }
  0x5f   : > { %s98_s5 = sadd.s32 1, %s1964_s20  ;;  %p2519_p7 = scmp.eq.s32.totalorder %s2147_s13, 0 }
  0x60   : > { %p105_p8 = scmp.ne.s32.totalorder %s1964_s20, %s1960_s19  ;;  %p111_p10 = scmp.ne.s32.totalorder %s1960_s19, %s1956_s18 }
  0x61   : > { %s2254_s9 = scalar_select %p2519_p7, %s1964_s20, %s98_s5  }
  0x62   : > { %p183_p3 = scmp.eq.s32.totalorder %s1231_s11, 3  ;;  %s265_s24 = sand.u32 1, %s1964_s20  }
  0x63   : > { %p2520_p5 = scmp.eq.s32.totalorder %s2008_s6, 0  ;;  %p2265_p11 = por %p111_p10, %p2490_p12 }
  0x64   : > { %p2522_p0 = scmp.eq.s32.totalorder %s2181_s12, 3  ;;  %p2275_p2 = por %p183_p3, %p111_p10 }
  0x65   : > { %p107_p6 = por %p105_p8, %p2520_p5  ;;  %s1242_s15 = sshll.u32 %s265_s24, 6 }
  0x66   : > { %p2271_p1 = por %p2522_p0, %p105_p8  ;;  %s1309_s17 = sshll.u32 %s2004_s30, 10 }
  0x67   : > { %s2524_s13 = scalar_select %p2275_p2, 1, 0 }
  0x68   : > { %s2523_s7 = scalar_select %p2271_p1, 1, 0 }
  0x69   : > { %s273_s27 = scalar_lea.hbm %s2472_s2, %s1309_s17  ;;  %s267_s11 = scalar_lea.vmem [#allocation8], %s1242_s15 }
  0x6a   : > { %s274_s5 = sshll.u32 %s267_s11, 4  ;;  %p2525_p9 = scmp.lt.s32.totalorder %s2008_s6, 4  ;;  %s275_s5 = int_to_ptr.vmem [resolvable:$true] %s274_s5 }
  0x6b   : > { %s1837_s3 = scalar_lea.vmem %s275_s5, 1024  ;;  %s2016_s24 = smov [#allocation8]  }
  0x6c   : > { %p2285_p7 = pnand %p2525_p9, %p107_p6  ;;  %p1838_p10 = scmp.ne.s32.totalorder %s275_s5, %s1837_s3 }
  0x6d   : > { %s1842_s30 = sshll.u32 %s2016_s24, 4  ;;  %s1843_s30 = int_to_ptr.vmem [resolvable:$false] %s1842_s30 }
  0x6e   : > { %p1826_p8 = pneg %p2285_p7  ;;  %s1844_s21 = scalar_lea.vmem %s1843_s30, 2048 }
  0x6f   : > { %p1845_p0 = scmp.lt.s32.totalorder %s275_s5, %s1843_s30  ;;  %p1846_p12 = scmp.lt.s32.totalorder %s1844_s21, %s1837_s3 }
  0x70   : > { %p1840_p3 = pnand %p1838_p10, %p1826_p8 }
  0x71   : > { %p1847_p2 = por %p1846_p12, %p1845_p0 }
  0x72   : > { %p1841_p5 = pneg %p1840_p3 }
  0x74   : > { %p1848_p1 = pnand %p1847_p2, %p1841_p5 }
  0x76   : > { %1851 = shalt.err (!%p1848_p1)
}
  0x77   : > { %1582 = dma.hbm_to_vmem [thread:$0]  (!%p2285_p7), %s273_s27, 1024, %s275_s5, %s2170_s14, %s2518_s8, %s2518_s8, %s2517_s16  }
  0x78   : > { %286 = sbr.rel (%p2196_p4) target bundleno = 707 (0x2c3), region = 40  ;;  %s288_s15 = sand.u32 (!%p2196_p4), 1, %s1984_s25  }
  0x79   : > { %s1246_s17 = sshll.u32 (!%p2196_p4), %s288_s15, 6  ;;  %s289_s23 = scalar_lea.sflag (!%p2196_p4), [#allocation4], %s288_s15 }
  0x7a   : > { %s2300_s30 = scalar_lea.vmem (!%p2196_p4), [#allocation3], %s1246_s17 }
  0x7d   : > { %1935 = dma.done.wait (%p2229_p13), %s289_s23, 1024  }
  0x7e   : > { %1937 = vsyncadd (%p2229_p13), %s289_s23, 4294966272  ;;  %s2527_s0 = sld [smem:[#allocation24_spill]]  ;;  %s297_s3 = sand.u32 1, %s2181_s12  }
  0x7f   : > { %s299_s14 = sand.u32 1, %s1972_s22   ;;  %s298_s10 = scalar_lea.sflag [#allocation7], %s297_s3 }
  0x80   : > { %s1247_s16 = sshll.u32 %s299_s14, 6 }
  0x81   : > { %s2308_s8 = scalar_lea.vmem [#allocation6], %s1247_s16 }
  0x84   : > { %p2528_p12 = scmp.ne.s32.totalorder %s2527_s0, 0 }
  0x86   : > { %1939 = dma.done.wait (%p2528_p12), %s298_s10, 1024  }
  0x87   : > { %1941 = vsyncadd (%p2528_p12), %s298_s10, 4294966272  ;;  %s308_s27 = sand.u32 1, %s1960_s19  }
  0x88   : > { %s1248_s4 = sshll.u32 %s308_s27, 6 }
  0x89   : > { %s2317_s11 = scalar_lea.vmem [#allocation8], %s1248_s4 }
  0x8a   : > { %1943 = dma.done.wait (%p2265_p11), %s298_s10, 1024  }
  0x8b   : > { %1945 = vsyncadd (%p2265_p11), %s298_s10, 4294966272  ;;  %p2529_p4 = scmp.eq.s32.totalorder %s2181_s12, 0 }
  0x8d   : > { %1947 = dma.done.wait (%p2529_p4), [#allocation10], 2048   ;;  %p2530_p13 = pmov %p2529_p4 }
  0x8e   : > { %s2327_s5 = scalar_lea.vmem [#allocation11], %s1248_s4  ;;  %s2531_s24 = sld [smem:[#allocation18_spill]] }
  0x8f   : > { %1949 = vsyncadd (%p2530_p13), [#allocation10], 4294965248 }
  0x94   : > { %p1251_p6 = scmp.ne.s32.totalorder %s2531_s24, 0 }
  0x96   : > { %359 = sbr.rel (%p1251_p6) target bundleno = 172 (0xac), region = 60 }
  0x9b   : > { %v1328_v0 = vld [vmem:[%s2317_s11] sm:$0xff]   ;;  %v1399_v1 = vld [vmem:[%s2317_s11 + $0x8] sm:$0xff]   ;;  %v1400_v2 = vld [vmem:[%s2317_s11 + $0x10] sm:$0xff]   ;;  %v2017_v3 = vmov 0.0  }
  0x9c   : > { %360 = vst [vmem:[#allocation2 + $0x68] sm:$0xff] %v2017_v3  ;;  %361 = vst [vmem:[#allocation2] sm:$0xff] %v2017_v3  ;;  %v1329_v4 = vunpack.c.l.bf16 %v1328_v0  ;;  %v1330_v5 = vunpack.c.h.bf16 %v1328_v0  ;;  %v1333_v6 = vunpack.c.l.bf16 %v1399_v1  ;;  %v1334_v7 = vunpack.c.h.bf16 %v1399_v1  ;;  %v1401_v8 = vld [vmem:[%s2317_s11 + $0x18] sm:$0xff]   ;;  %v1402_v9 = vld [vmem:[%s2317_s11 + $0x20] sm:$0xff]  }
  0x9d   : > { %362 = vst [vmem:[#allocation2 + $0xb8] sm:$0xff] %v2017_v3  ;;  %363 = vst [vmem:[#allocation2 + $0x30] sm:$0xff] %v2017_v3  ;;  %v1403_v10 = vld [vmem:[%s2317_s11 + $0x28] sm:$0xff]   ;;  %v1337_v11 = vunpack.c.l.bf16 %v1400_v2  ;;  %v1338_v12 = vunpack.c.h.bf16 %v1400_v2  ;;  %v1341_v13 = vunpack.c.l.bf16 %v1401_v8  ;;  %v1342_v14 = vunpack.c.h.bf16 %v1401_v8  ;;  %v1404_v15 = vld [vmem:[%s2317_s11 + $0x30] sm:$0xff]  }
  0x9e   : > { %364 = vst [vmem:[#allocation2 + $0xa0] sm:$0xff] %v2017_v3  ;;  %365 = vst [vmem:[#allocation2 + $0xd0] sm:$0xff] %v2017_v3  ;;  %v1405_v16 = vld [vmem:[%s2317_s11 + $0x38] sm:$0xff]   ;;  %v1345_v17 = vunpack.c.l.bf16 %v1402_v9  ;;  %v1346_v18 = vunpack.c.h.bf16 %v1402_v9  ;;  %v1349_v19 = vunpack.c.l.bf16 %v1403_v10  ;;  %v1350_v20 = vunpack.c.h.bf16 %v1403_v10 }
  0x9f   : > { %366 = vst [vmem:[#allocation2 + $0x60] sm:$0xff] %v2017_v3  ;;  %367 = vst [vmem:[#allocation2 + $0x90] sm:$0xff] %v2017_v3  ;;  %v1353_v21 = vunpack.c.l.bf16 %v1404_v15  ;;  %v1354_v22 = vunpack.c.h.bf16 %v1404_v15  ;;  %v1357_v23 = vunpack.c.l.bf16 %v1405_v16  ;;  %v1358_v24 = vunpack.c.h.bf16 %v1405_v16 }
  0xa0   : > { %368 = vst [vmem:[#allocation2 + $0x8] sm:$0xff] %v2017_v3  ;;  %369 = vst [vmem:[#allocation2 + $0x18] sm:$0xff] %v2017_v3 }
  0xa1   : > { %370 = vst [vmem:[#allocation2 + $0xd8] sm:$0xff] %v2017_v3  ;;  %371 = vst [vmem:[#allocation2 + $0x78] sm:$0xff] %v2017_v3 }
  0xa2   : > { %372 = vst [vmem:[#allocation2 + $0xc0] sm:$0xff] %v2017_v3  ;;  %373 = vst [vmem:[#allocation2 + $0xe8] sm:$0xff] %v2017_v3 }
  0xa3   : > { %374 = vst [vmem:[#allocation2 + $0x10] sm:$0xff] %v2017_v3  ;;  %375 = vst [vmem:[#allocation2 + $0xf0] sm:$0xff] %v2017_v3 }
  0xa4   : > { %408 = vst [vmem:[#allocation2 + $0x70] sm:$0xff] %v1329_v4  ;;  %409 = vst [vmem:[#allocation2 + $0xb0] sm:$0xff] %v1330_v5 }
  0xa5   : > { %410 = vst [vmem:[#allocation2 + $0x80] sm:$0xff] %v1333_v6  ;;  %411 = vst [vmem:[#allocation2 + $0x98] sm:$0xff] %v1334_v7 }
  0xa6   : > { %412 = vst [vmem:[#allocation2 + $0xc8] sm:$0xff] %v1337_v11  ;;  %413 = vst [vmem:[#allocation2 + $0x28] sm:$0xff] %v1338_v12 }
  0xa7   : > { %414 = vst [vmem:[#allocation2 + $0xe0] sm:$0xff] %v1341_v13  ;;  %415 = vst [vmem:[#allocation2 + $0x88] sm:$0xff] %v1342_v14 }
  0xa8   : > { %416 = vst [vmem:[#allocation2 + $0x58] sm:$0xff] %v1345_v17  ;;  %417 = vst [vmem:[#allocation2 + $0xa8] sm:$0xff] %v1346_v18 }
  0xa9   : > { %418 = vst [vmem:[#allocation2 + $0x20] sm:$0xff] %v1349_v19  ;;  %419 = vst [vmem:[#allocation2 + $0x50] sm:$0xff] %v1350_v20 }
  0xaa   : > { %420 = vst [vmem:[#allocation2 + $0x48] sm:$0xff] %v1353_v21  ;;  %421 = vst [vmem:[#allocation2 + $0xf8] sm:$0xff] %v1354_v22 }
  0xab   : > { %422 = vst [vmem:[#allocation2 + $0x40] sm:$0xff] %v1357_v23  ;;  %423 = vst [vmem:[#allocation2 + $0x38] sm:$0xff] %v1358_v24 }
  0xac PF: > { %v1710_v25 = vld [vmem:[%s2308_s8 + $0x38] sm:$0xff]   ;;  %v1711_v26 = vld [vmem:[%s2308_s8 + $0x30] sm:$0xff]   ;;  %v1712_v27 = vld [vmem:[%s2308_s8 + $0x28] sm:$0xff]   ;;  %s2532_s12 = sld [smem:[#allocation18_spill]] }
  0xad   : > { %1493 = vmatprep.subr.bf16.mxu0 %v1710_v25  ;;  %1525 = vmatprep.subr.bf16.mxu1 %v1710_v25  ;;  %v1713_v28 = vld [vmem:[%s2308_s8 + $0x20] sm:$0xff]   ;;  %v1714_v31 = vld [vmem:[%s2308_s8 + $0x18] sm:$0xff]   ;;  %v1715_v32 = vld [vmem:[%s2308_s8 + $0x10] sm:$0xff]  }
  0xae   : > { %1494 = vmatpush3.bf16.msra.mxu0 %v1710_v25  ;;  %1533 = vmatpush3.bf16.msra.mxu1 %v1710_v25  ;;  %v1718_v29 = vld [vmem:[%s2300_s30] sm:$0xff]   ;;  %v1716_v33 = vld [vmem:[%s2308_s8 + $0x8] sm:$0xff]   ;;  %v1722_v37 = vld [vmem:[%s2300_s30 + $0x10] sm:$0xff]  }
  0xaf   : > { %1495 = vmatprep.subr.bf16.mxu0 %v1711_v26  ;;  %1526 = vmatprep.subr.bf16.mxu1 %v1711_v26  ;;  %v1719_v30 = vld [vmem:[%s2300_s30 + $0x20] sm:$0xff]   ;;  %v1720_v35 = vld [vmem:[%s2300_s30 + $0x8] sm:$0xff]   ;;  %v1723_v38 = vld [vmem:[%s2300_s30 + $0x30] sm:$0xff]  }
  0xb0   : > { %1509 = vmatprep.mubr.bf16.mxu0 %v1718_v29  ;;  %1517 = vmatprep.mubr.bf16.mxu1 %v1719_v30  ;;  %v1717_v34 = vld [vmem:[%s2308_s8] sm:$0xff]   ;;  %v1721_v36 = vld [vmem:[%s2300_s30 + $0x28] sm:$0xff]   ;;  %v1724_v39 = vld [vmem:[%s2300_s30 + $0x18] sm:$0xff]  }
  0xb1   : > { %v1725_v40 = vld [vmem:[%s2300_s30 + $0x38] sm:$0xff]   ;;  %v424_v45 = vld [vmem:[#allocation2 + $0x68] sm:$0xff]  ;;  %v427_v51 = vld [vmem:[#allocation2 + $0x30] sm:$0xff] }
  0xb2   : > { %1496 = vmatpush3.bf16.msra.mxu0 %v1711_v26  ;;  %1534 = vmatpush3.bf16.msra.mxu1 %v1711_v26  ;;  %v426_v41 = vld [vmem:[#allocation2 + $0xb8] sm:$0xff]  ;;  %v432_v46 = vld [vmem:[#allocation2 + $0x8] sm:$0xff]  ;;  %v425_v57 = vld [vmem:[#allocation2] sm:$0xff]  ;;  %p1268_p11 = scmp.ne.s32.totalorder %s2532_s12, 1 }
  0xb3   : > { %1497 = vmatprep.subr.bf16.mxu0 %v1712_v27  ;;  %1527 = vmatprep.subr.bf16.mxu1 %v1712_v27  ;;  %v434_v42 = vld [vmem:[#allocation2 + $0xd8] sm:$0xff]  ;;  %v430_v63 = vld [vmem:[#allocation2 + $0x60] sm:$0xff]  ;;  %v438_v0 = vld [vmem:[#allocation2 + $0x10] sm:$0xff]  ;;  %s2533_s15 = sld [smem:[#allocation28_spill]] (!%p1268_p11) }
  0xb4   : > { %v435_v52 = vld [vmem:[#allocation2 + $0x78] sm:$0xff]  ;;  %v428_v5 = vld [vmem:[#allocation2 + $0xa0] sm:$0xff]  ;;  %v431_v11 = vld [vmem:[#allocation2 + $0x90] sm:$0xff] }
  0xb5   : > { %v433_v58 = vld [vmem:[#allocation2 + $0x18] sm:$0xff]  ;;  %v436_v6 = vld [vmem:[#allocation2 + $0xc0] sm:$0xff]  ;;  %v439_v12 = vld [vmem:[#allocation2 + $0xf0] sm:$0xff] }
  0xb6   : > { %1498 = vmatpush3.bf16.msra.mxu0 %v1712_v27  ;;  %1535 = vmatpush3.bf16.msra.mxu1 %v1712_v27  ;;  %v429_v17 = vld [vmem:[#allocation2 + $0xd0] sm:$0xff]  ;;  %v437_v18 = vld [vmem:[#allocation2 + $0xe8] sm:$0xff] }
  0xb7   : > { %1499 = vmatprep.subr.bf16.mxu0 %v1713_v28  ;;  %1528 = vmatprep.subr.bf16.mxu1 %v1713_v28 }
  0xba   : > { %1500 = vmatpush3.bf16.msra.mxu0 %v1713_v28  ;;  %1536 = vmatpush3.bf16.msra.mxu1 %v1713_v28 }
  0xbb   : > { %1501 = vmatprep.subr.bf16.mxu0 %v1714_v31  ;;  %1529 = vmatprep.subr.bf16.mxu1 %v1714_v31 }
  0xbe   : > { %1502 = vmatpush3.bf16.msra.mxu0 %v1714_v31  ;;  %1537 = vmatpush3.bf16.msra.mxu1 %v1714_v31 }
  0xbf   : > { %1503 = vmatprep.subr.bf16.mxu0 %v1715_v32  ;;  %1530 = vmatprep.subr.bf16.mxu1 %v1715_v32 }
  0xc2   : > { %1504 = vmatpush3.bf16.msra.mxu0 %v1715_v32  ;;  %1538 = vmatpush3.bf16.msra.mxu1 %v1715_v32 }
  0xc3   : > { %1505 = vmatprep.subr.bf16.mxu0 %v1716_v33  ;;  %1531 = vmatprep.subr.bf16.mxu1 %v1716_v33 }
  0xc6   : > { %1506 = vmatpush3.bf16.msra.mxu0 %v1716_v33  ;;  %1539 = vmatpush3.bf16.msra.mxu1 %v1716_v33 }
  0xc7   : > { %1507 = vmatprep.subr.bf16.mxu0 %v1717_v34  ;;  %1532 = vmatprep.subr.bf16.mxu1 %v1717_v34 }
  0xca   : > { %1508 = vmatpush3.bf16.msra.mxu0 %v1717_v34  ;;  %1540 = vmatpush3.bf16.msra.mxu1 %v1717_v34 }
  0xcd   : > { %1510 = vmatmul.mubr.bf16.vlgmr.msra.gmra.mxu0 %v1720_v35  ;;  %1518 = vmatmul.mubr.bf16.vlgmr.msra.gmra.mxu1 %v1721_v36 }
  0xce   : > { %1513 = vmatprep.mubr.bf16.mxu0 %v1722_v37  ;;  %1521 = vmatprep.mubr.bf16.mxu1 %v1723_v38 }
  0xd5   : > { %1514 = vmatmul.mubr.bf16.gmra.mxu0 %v1724_v39  ;;  %1522 = vmatmul.mubr.bf16.gmra.mxu1 %v1725_v40 }
 0x18d   : > { %v1511_v43 = vpop.f32.mrf.mxu0  ;;  %v1519_v44 = vpop.f32.mrf.mxu1 }
 0x18e   : > { %v667_v47 = vadd.f32 %v1511_v43, %v426_v41  ;;  %v675_v48 = vadd.f32 %v1519_v44, %v434_v42 }
 0x18f   : > { %v602_v49 = vpop.f32.mrf.mxu0  ;;  %v634_v50 = vpop.f32.mrf.mxu1 }
 0x190   : > { %683 = vst [vmem:[#allocation2 + $0xb8] sm:$0xff] %v667_v47  ;;  %691 = vst [vmem:[#allocation2 + $0xd8] sm:$0xff] %v675_v48  ;;  %v665_v53 = vadd.f32 %v602_v49, %v424_v45  ;;  %v673_v54 = vadd.f32 %v634_v50, %v432_v46 }
 0x191   : > { %v1512_v55 = vpop.f32.mrf.mxu0  ;;  %v1520_v56 = vpop.f32.mrf.mxu1 }
 0x192   : > { %681 = vst [vmem:[#allocation2 + $0x68] sm:$0xff] %v665_v53  ;;  %689 = vst [vmem:[#allocation2 + $0x8] sm:$0xff] %v673_v54  ;;  %v668_v59 = vadd.f32 %v1512_v55, %v427_v51  ;;  %v676_v60 = vadd.f32 %v1520_v56, %v435_v52 }
 0x193   : > { %v605_v61 = vpop.f32.mrf.mxu0  ;;  %v637_v62 = vpop.f32.mrf.mxu1 }
 0x194   : > { %684 = vst [vmem:[#allocation2 + $0x30] sm:$0xff] %v668_v59  ;;  %692 = vst [vmem:[#allocation2 + $0x78] sm:$0xff] %v676_v60  ;;  %v666_v1 = vadd.f32 %v605_v61, %v425_v57  ;;  %v674_v2 = vadd.f32 %v637_v62, %v433_v58 }
 0x195   : > { %v1515_v3 = vpop.f32.mrf.mxu0  ;;  %v1523_v4 = vpop.f32.mrf.mxu1 }
 0x196   : > { %682 = vst [vmem:[#allocation2] sm:$0xff] %v666_v1  ;;  %690 = vst [vmem:[#allocation2 + $0x18] sm:$0xff] %v674_v2  ;;  %v671_v7 = vadd.f32 %v1515_v3, %v430_v63  ;;  %v679_v8 = vadd.f32 %v1523_v4, %v438_v0 }
 0x197   : > { %v618_v9 = vpop.f32.mrf.mxu0  ;;  %v650_v10 = vpop.f32.mrf.mxu1 }
 0x198   : > { %687 = vst [vmem:[#allocation2 + $0x60] sm:$0xff] %v671_v7  ;;  %695 = vst [vmem:[#allocation2 + $0x10] sm:$0xff] %v679_v8  ;;  %v669_v13 = vadd.f32 %v618_v9, %v428_v5  ;;  %v677_v14 = vadd.f32 %v650_v10, %v436_v6 }
 0x199   : > { %v1516_v15 = vpop.f32.mrf.mxu0  ;;  %v1524_v16 = vpop.f32.mrf.mxu1 }
 0x19a   : > { %685 = vst [vmem:[#allocation2 + $0xa0] sm:$0xff] %v669_v13  ;;  %693 = vst [vmem:[#allocation2 + $0xc0] sm:$0xff] %v677_v14  ;;  %v672_v19 = vadd.f32 %v1516_v15, %v431_v11  ;;  %v680_v20 = vadd.f32 %v1524_v16, %v439_v12  ;;  %700 = sbr.rel (%p1268_p11) target bundleno = 680 (0x2a8), region = 64 }
 0x19b   : > { %v621_v21 = vpop.f32.mrf.mxu0  ;;  %v653_v22 = vpop.f32.mrf.mxu1 }
 0x19c   : > { %688 = vst [vmem:[#allocation2 + $0x90] sm:$0xff] %v672_v19  ;;  %696 = vst [vmem:[#allocation2 + $0xf0] sm:$0xff] %v680_v20  ;;  %v670_v23 = vadd.f32 %v621_v21, %v429_v17  ;;  %v678_v24 = vadd.f32 %v653_v22, %v437_v18 }
 0x19e   : > { %686 = vst [vmem:[#allocation2 + $0xd0] sm:$0xff] %v670_v23  ;;  %694 = vst [vmem:[#allocation2 + $0xe8] sm:$0xff] %v678_v24 }
 0x19f   : > { %v1726_v25 = vld [vmem:[#allocation9 + $0x78] sm:$0xff]   ;;  %v1728_v27 = vld [vmem:[#allocation9 + $0x70] sm:$0xff]   ;;  %v1730_v29 = vld [vmem:[#allocation9 + $0x68] sm:$0xff]  }
 0x1a0   : > { %v1727_v26 = vld [vmem:[#allocation9 + $0x38] sm:$0xff]   ;;  %1429 = vmatprep.subr.bf16.mxu0 %v1726_v25  ;;  %1541 = vmatprep.subr.bf16.mxu1 %v1726_v25  ;;  %v1729_v28 = vld [vmem:[#allocation9 + $0x30] sm:$0xff]   ;;  %v1731_v30 = vld [vmem:[#allocation9 + $0x28] sm:$0xff]  }
 0x1a1   : > { %1430 = vmatpush3.bf16.msra.mxu0 %v1727_v26  ;;  %1549 = vmatpush3.bf16.msra.mxu1 %v1727_v26  ;;  %v1732_v31 = vld [vmem:[#allocation9 + $0x60] sm:$0xff]   ;;  %v1734_v33 = vld [vmem:[#allocation9 + $0x58] sm:$0xff]   ;;  %v1736_v35 = vld [vmem:[#allocation9 + $0x50] sm:$0xff]  }
 0x1a2   : > { %1431 = vmatprep.subr.bf16.mxu0 %v1728_v27  ;;  %1542 = vmatprep.subr.bf16.mxu1 %v1728_v27  ;;  %v1733_v32 = vld [vmem:[#allocation9 + $0x20] sm:$0xff]   ;;  %v1735_v34 = vld [vmem:[#allocation9 + $0x18] sm:$0xff]   ;;  %v702_v36 = vld [vmem:[#allocation2 + $0x70] sm:$0xff] }
 0x1a3   : > { %v704_v37 = vld [vmem:[#allocation2 + $0xb0] sm:$0xff]  ;;  %v718_v38 = vld [vmem:[#allocation2 + $0x58] sm:$0xff]  ;;  %v720_v40 = vld [vmem:[#allocation2 + $0xa8] sm:$0xff] }
 0x1a4   : > { %v734_v39 = vpack.c.bf16 %v704_v37, %v702_v36  ;;  %v742_v41 = vpack.c.bf16 %v720_v40, %v718_v38  ;;  %v1737_v42 = vld [vmem:[#allocation9 + $0x10] sm:$0xff]   ;;  %v1738_v43 = vld [vmem:[#allocation9 + $0x48] sm:$0xff]   ;;  %v1740_v45 = vld [vmem:[#allocation9 + $0x40] sm:$0xff]  }
 0x1a5   : > { %1432 = vmatpush3.bf16.msra.mxu0 %v1729_v28  ;;  %1550 = vmatpush3.bf16.msra.mxu1 %v1729_v28  ;;  %v1739_v44 = vld [vmem:[#allocation9 + $0x8] sm:$0xff]   ;;  %v1741_v46 = vld [vmem:[#allocation9] sm:$0xff]   ;;  %v719_v50 = vld [vmem:[#allocation2 + $0x18] sm:$0xff] }
 0x1a6   : > { %1433 = vmatprep.subr.bf16.mxu0 %v1730_v29  ;;  %1543 = vmatprep.subr.bf16.mxu1 %v1730_v29  ;;  %v701_v47 = vld [vmem:[#allocation2 + $0x68] sm:$0xff]  ;;  %v703_v48 = vld [vmem:[#allocation2] sm:$0xff]  ;;  %v708_v52 = vld [vmem:[#allocation2 + $0x98] sm:$0xff] }
 0x1a7   : > { %916 = vmatprep.mubr.bf16.mxu0 %v734_v39  ;;  %948 = vmatprep.mubr.bf16.mxu1 %v742_v41  ;;  %v717_v49 = vld [vmem:[#allocation2 + $0x8] sm:$0xff]  ;;  %v706_v51 = vld [vmem:[#allocation2 + $0x80] sm:$0xff]  ;;  %v724_v54 = vld [vmem:[#allocation2 + $0x50] sm:$0xff]  ;;  %v733_v55 = vpack.c.bf16 %v703_v48, %v701_v47 }
 0x1a8   : > { %v722_v53 = vld [vmem:[#allocation2 + $0x20] sm:$0xff]  ;;  %v741_v56 = vpack.c.bf16 %v719_v50, %v717_v49  ;;  %v736_v57 = vpack.c.bf16 %v708_v52, %v706_v51  ;;  %v705_v59 = vld [vmem:[#allocation2 + $0xb8] sm:$0xff]  ;;  %v707_v60 = vld [vmem:[#allocation2 + $0x30] sm:$0xff] }
 0x1a9   : > { %1434 = vmatpush3.bf16.msra.mxu0 %v1731_v30  ;;  %1551 = vmatpush3.bf16.msra.mxu1 %v1731_v30  ;;  %v744_v58 = vpack.c.bf16 %v724_v54, %v722_v53  ;;  %v721_v61 = vld [vmem:[#allocation2 + $0xd8] sm:$0xff]  ;;  %v710_v63 = vld [vmem:[#allocation2 + $0xc8] sm:$0xff]  ;;  %v735_v3 = vpack.c.bf16 %v707_v60, %v705_v59  ;;  %v709_v7 = vld [vmem:[#allocation2 + $0xa0] sm:$0xff] }
 0x1aa   : > { %1435 = vmatprep.subr.bf16.mxu0 %v1732_v31  ;;  %1544 = vmatprep.subr.bf16.mxu1 %v1732_v31  ;;  %v723_v62 = vld [vmem:[#allocation2 + $0x78] sm:$0xff]  ;;  %v712_v0 = vld [vmem:[#allocation2 + $0x28] sm:$0xff]  ;;  %v711_v8 = vld [vmem:[#allocation2 + $0xd0] sm:$0xff] }
 0x1ab   : > { %v726_v1 = vld [vmem:[#allocation2 + $0x48] sm:$0xff]  ;;  %v728_v2 = vld [vmem:[#allocation2 + $0xf8] sm:$0xff]  ;;  %v743_v4 = vpack.c.bf16 %v723_v62, %v721_v61  ;;  %v738_v5 = vpack.c.bf16 %v712_v0, %v710_v63  ;;  %v725_v9 = vld [vmem:[#allocation2 + $0xc0] sm:$0xff]  ;;  %v737_v15 = vpack.c.bf16 %v711_v8, %v709_v7 }
 0x1ac   : > { %v746_v6 = vpack.c.bf16 %v728_v2, %v726_v1  ;;  %v727_v10 = vld [vmem:[#allocation2 + $0xe8] sm:$0xff]  ;;  %v714_v11 = vld [vmem:[#allocation2 + $0xe0] sm:$0xff]  ;;  %v732_v14 = vld [vmem:[#allocation2 + $0x38] sm:$0xff] }
 0x1ad   : > { %1436 = vmatpush3.bf16.msra.mxu0 %v1733_v32  ;;  %1552 = vmatpush3.bf16.msra.mxu1 %v1733_v32  ;;  %v716_v12 = vld [vmem:[#allocation2 + $0x88] sm:$0xff]  ;;  %v730_v13 = vld [vmem:[#allocation2 + $0x40] sm:$0xff]  ;;  %v745_v16 = vpack.c.bf16 %v727_v10, %v725_v9  ;;  %v715_v20 = vld [vmem:[#allocation2 + $0x90] sm:$0xff] }
 0x1ae   : > { %1437 = vmatprep.subr.bf16.mxu0 %v1734_v33  ;;  %1545 = vmatprep.subr.bf16.mxu1 %v1734_v33  ;;  %v740_v17 = vpack.c.bf16 %v716_v12, %v714_v11  ;;  %v748_v18 = vpack.c.bf16 %v732_v14, %v730_v13  ;;  %v713_v19 = vld [vmem:[#allocation2 + $0x60] sm:$0xff]  ;;  %v729_v21 = vld [vmem:[#allocation2 + $0x10] sm:$0xff] }
 0x1af   : > { %v731_v22 = vld [vmem:[#allocation2 + $0xf0] sm:$0xff]  ;;  %v739_v23 = vpack.c.bf16 %v715_v20, %v713_v19  ;;  %v2358_v29 = vld [vmem:[%s2533_s15] ss:$0 sm:$0xff] }
 0x1b0   : > { %v747_v24 = vpack.c.bf16 %v731_v22, %v729_v21 }
 0x1b1   : > { %1438 = vmatpush3.bf16.msra.mxu0 %v1735_v34  ;;  %1553 = vmatpush3.bf16.msra.mxu1 %v1735_v34 }
 0x1b2   : > { %1439 = vmatprep.subr.bf16.mxu0 %v1736_v35  ;;  %1546 = vmatprep.subr.bf16.mxu1 %v1736_v35 }
 0x1b5   : > { %1440 = vmatpush3.bf16.msra.mxu0 %v1737_v42  ;;  %1554 = vmatpush3.bf16.msra.mxu1 %v1737_v42 }
 0x1b6   : > { %1441 = vmatprep.subr.bf16.mxu0 %v1738_v43  ;;  %1547 = vmatprep.subr.bf16.mxu1 %v1738_v43 }
 0x1b9   : > { %1442 = vmatpush3.bf16.msra.mxu0 %v1739_v44  ;;  %1555 = vmatpush3.bf16.msra.mxu1 %v1739_v44 }
 0x1ba   : > { %1443 = vmatprep.subr.bf16.mxu0 %v1740_v45  ;;  %1548 = vmatprep.subr.bf16.mxu1 %v1740_v45 }
 0x1bd   : > { %1444 = vmatpush3.bf16.msra.mxu0 %v1741_v46  ;;  %1556 = vmatpush3.bf16.msra.mxu1 %v1741_v46 }
 0x1c0   : > { %917 = vmatmul.mubr.bf16.vlgmr.msra.gmra.mxu0 %v733_v55  ;;  %949 = vmatmul.mubr.bf16.vlgmr.msra.gmra.mxu1 %v741_v56 }
 0x1c1   : > { %924 = vmatprep.mubr.bf16.mxu0 %v736_v57  ;;  %956 = vmatprep.mubr.bf16.mxu1 %v744_v58 }
 0x1c8   : > { %925 = vmatmul.mubr.bf16.gmra.mxu0 %v735_v3  ;;  %957 = vmatmul.mubr.bf16.gmra.mxu1 %v743_v4 }
 0x1c9   : > { %932 = vmatprep.mubr.bf16.mxu0 %v738_v5  ;;  %964 = vmatprep.mubr.bf16.mxu1 %v746_v6 }
 0x1d0   : > { %933 = vmatmul.mubr.bf16.gmra.mxu0 %v737_v15  ;;  %965 = vmatmul.mubr.bf16.gmra.mxu1 %v745_v16 }
 0x1d1   : > { %940 = vmatprep.mubr.bf16.mxu0 %v740_v17  ;;  %972 = vmatprep.mubr.bf16.mxu1 %v748_v18 }
 0x1d8   : > { %941 = vmatmul.mubr.bf16.gmra.mxu0 %v739_v23  ;;  %973 = vmatmul.mubr.bf16.gmra.mxu1 %v747_v24 }
 0x280   : > { %v1445_v25 = vpop.f32.mrf.mxu0  ;;  %v1469_v26 = vpop.f32.mrf.mxu1 }
 0x282   : > { %v1446_v27 = vpop.f32.mrf.mxu0  ;;  %v1470_v28 = vpop.f32.mrf.mxu1 }
 0x283   : > { %v1447_v30 = vadd.f32 %v1446_v27, %v1445_v25  ;;  %v1471_v31 = vadd.f32 %v1470_v28, %v1469_v26 }
 0x284   : > { %v1448_v32 = vpop.f32.mrf.mxu0  ;;  %v1472_v33 = vpop.f32.mrf.mxu1 }
 0x285   : > { %v919_v34 = vadd.f32 %v1447_v30, %v2358_v29  ;;  %v951_v35 = vadd.f32 %v1471_v31, %v2358_v29 }
 0x286   : > { %v1449_v36 = vpop.f32.mrf.mxu0  ;;  %v1473_v37 = vpop.f32.mrf.mxu1 }
 0x287   : > { %v1450_v38 = vadd.f32 %v1449_v36, %v1448_v32  ;;  %v1474_v39 = vadd.f32 %v1473_v37, %v1472_v33  ;;  %v981_v44 = vmax.f32 %v919_v34, 0.0  ;;  %v989_v45 = vmax.f32 %v951_v35, 0.0 }
 0x288   : > { %v1451_v40 = vpop.f32.mrf.mxu0  ;;  %v1475_v41 = vpop.f32.mrf.mxu1 }
 0x289   : > { %v922_v42 = vadd.f32 %v1450_v38, %v2358_v29  ;;  %v954_v43 = vadd.f32 %v1474_v39, %v2358_v29 }
 0x28a   : > { %v1452_v46 = vpop.f32.mrf.mxu0  ;;  %v1476_v47 = vpop.f32.mrf.mxu1 }
 0x28b   : > { %v982_v48 = vmax.f32 %v922_v42, 0.0  ;;  %v990_v49 = vmax.f32 %v954_v43, 0.0  ;;  %v1453_v50 = vadd.f32 %v1452_v46, %v1451_v40  ;;  %v1477_v51 = vadd.f32 %v1476_v47, %v1475_v41 }
 0x28c   : > { %v1454_v52 = vpop.f32.mrf.mxu0  ;;  %v1478_v53 = vpop.f32.mrf.mxu1 }
 0x28d   : > { %v1362_v54 = vpack.c.bf16 %v982_v48, %v981_v44  ;;  %v1382_v55 = vpack.c.bf16 %v990_v49, %v989_v45  ;;  %v927_v56 = vadd.f32 %v1453_v50, %v2358_v29  ;;  %v959_v57 = vadd.f32 %v1477_v51, %v2358_v29 }
 0x28e   : > { %v1455_v58 = vpop.f32.mrf.mxu0  ;;  %v1479_v59 = vpop.f32.mrf.mxu1 }
 0x28f   : > { %1363 = vst [vmem:[%s2327_s5] sm:$0xff] %v1362_v54   ;;  %1409 = vst [vmem:[%s2327_s5 + $0x20] sm:$0xff] %v1382_v55   ;;  %v1456_v60 = vadd.f32 %v1455_v58, %v1454_v52  ;;  %v1480_v61 = vadd.f32 %v1479_v59, %v1478_v53  ;;  %v983_v2 = vmax.f32 %v927_v56, 0.0  ;;  %v991_v3 = vmax.f32 %v959_v57, 0.0 }
 0x290   : > { %v1457_v62 = vpop.f32.mrf.mxu0  ;;  %v1481_v63 = vpop.f32.mrf.mxu1 }
 0x291   : > { %v930_v0 = vadd.f32 %v1456_v60, %v2358_v29  ;;  %v962_v1 = vadd.f32 %v1480_v61, %v2358_v29 }
 0x292   : > { %v1458_v4 = vpop.f32.mrf.mxu0  ;;  %v1482_v5 = vpop.f32.mrf.mxu1 }
 0x293   : > { %v984_v6 = vmax.f32 %v930_v0, 0.0  ;;  %v992_v7 = vmax.f32 %v962_v1, 0.0  ;;  %v1459_v8 = vadd.f32 %v1458_v4, %v1457_v62  ;;  %v1483_v9 = vadd.f32 %v1482_v5, %v1481_v63 }
 0x294   : > { %v1460_v10 = vpop.f32.mrf.mxu0  ;;  %v1484_v11 = vpop.f32.mrf.mxu1 }
 0x295   : > { %v1367_v12 = vpack.c.bf16 %v984_v6, %v983_v2  ;;  %v1387_v13 = vpack.c.bf16 %v992_v7, %v991_v3  ;;  %v935_v14 = vadd.f32 %v1459_v8, %v2358_v29  ;;  %v967_v15 = vadd.f32 %v1483_v9, %v2358_v29 }
 0x296   : > { %v1461_v16 = vpop.f32.mrf.mxu0  ;;  %v1485_v17 = vpop.f32.mrf.mxu1 }
 0x297   : > { %1406 = vst [vmem:[%s2327_s5 + $0x8] sm:$0xff] %v1367_v12   ;;  %1410 = vst [vmem:[%s2327_s5 + $0x28] sm:$0xff] %v1387_v13   ;;  %v1462_v18 = vadd.f32 %v1461_v16, %v1460_v10  ;;  %v1486_v19 = vadd.f32 %v1485_v17, %v1484_v11  ;;  %v985_v24 = vmax.f32 %v935_v14, 0.0  ;;  %v993_v25 = vmax.f32 %v967_v15, 0.0 }
 0x298   : > { %v1463_v20 = vpop.f32.mrf.mxu0  ;;  %v1487_v21 = vpop.f32.mrf.mxu1 }
 0x299   : > { %v938_v22 = vadd.f32 %v1462_v18, %v2358_v29  ;;  %v970_v23 = vadd.f32 %v1486_v19, %v2358_v29 }
 0x29a   : > { %v1464_v26 = vpop.f32.mrf.mxu0  ;;  %v1488_v27 = vpop.f32.mrf.mxu1 }
 0x29b   : > { %v986_v28 = vmax.f32 %v938_v22, 0.0  ;;  %v994_v30 = vmax.f32 %v970_v23, 0.0  ;;  %v1465_v31 = vadd.f32 %v1464_v26, %v1463_v20  ;;  %v1489_v32 = vadd.f32 %v1488_v27, %v1487_v21 }
 0x29c   : > { %v1466_v33 = vpop.f32.mrf.mxu0  ;;  %v1490_v34 = vpop.f32.mrf.mxu1 }
 0x29d   : > { %v1372_v35 = vpack.c.bf16 %v986_v28, %v985_v24  ;;  %v1392_v36 = vpack.c.bf16 %v994_v30, %v993_v25  ;;  %v943_v39 = vadd.f32 %v1465_v31, %v2358_v29  ;;  %v975_v40 = vadd.f32 %v1489_v32, %v2358_v29 }
 0x29e   : > { %v1467_v37 = vpop.f32.mrf.mxu0  ;;  %v1491_v38 = vpop.f32.mrf.mxu1 }
 0x29f   : > { %1407 = vst [vmem:[%s2327_s5 + $0x10] sm:$0xff] %v1372_v35   ;;  %1411 = vst [vmem:[%s2327_s5 + $0x30] sm:$0xff] %v1392_v36   ;;  %v1468_v41 = vadd.f32 %v1467_v37, %v1466_v33  ;;  %v1492_v42 = vadd.f32 %v1491_v38, %v1490_v34  ;;  %v987_v45 = vmax.f32 %v943_v39, 0.0  ;;  %v995_v46 = vmax.f32 %v975_v40, 0.0 }
 0x2a1   : > { %v946_v43 = vadd.f32 %v1468_v41, %v2358_v29  ;;  %v978_v44 = vadd.f32 %v1492_v42, %v2358_v29 }
 0x2a3   : > { %v988_v47 = vmax.f32 %v946_v43, 0.0  ;;  %v996_v48 = vmax.f32 %v978_v44, 0.0 }
 0x2a5   : > { %v1377_v49 = vpack.c.bf16 %v988_v47, %v987_v45  ;;  %v1397_v50 = vpack.c.bf16 %v996_v48, %v995_v46 }
 0x2a7   : > { %1408 = vst [vmem:[%s2327_s5 + $0x18] sm:$0xff] %v1377_v49   ;;  %1412 = vst [vmem:[%s2327_s5 + $0x38] sm:$0xff] %v1397_v50  }
 0x2a8 PF: > { %s2534_s17 = sld [smem:[#allocation19_spill]]  ;;  %s1091_s16 = sshll.u32 %s2327_s5, 4  ;;  %s2391_s16 = int_to_ptr.vmem [resolvable:$true] %s1091_s16 }
 0x2a9   : > { %s2535_s3 = sld [smem:[#allocation29_spill]]  ;;  %s2395_s10 = scalar_lea.sflag [#allocation5], %s308_s27 }
 0x2aa   : > { %s1852_s8 = scalar_lea.vmem %s2391_s16, 1024  ;;  %p2536_p2 = scmp.ne.s32.totalorder %s2523_s7, 0 }
 0x2ab   : > { %p1853_p1 = scmp.ne.s32.totalorder %s2391_s16, %s1852_s8  ;;  %s2018_s4 = smov [#allocation11]  }
 0x2ac   : > { %s1856_s11 = sshll.u32 %s2018_s4, 4  ;;  %s1857_s11 = int_to_ptr.vmem [resolvable:$false] %s1856_s11 }
 0x2ad   : > { %p1854_p9 = pnand %p1853_p1, %p2536_p2  ;;  %s1858_s24 = scalar_lea.vmem %s1857_s11, 2048 }
 0x2ae   : > { %s1326_s23 = sshll.u32 %s2534_s17, 10  ;;  %p1859_p8 = scmp.lt.s32.totalorder %s2391_s16, %s1857_s11 }
 0x2af   : > { %s2388_s14 = scalar_lea.hbm %s2535_s3, %s1326_s23  ;;  %p1855_p7 = pneg %p1854_p9 }
 0x2b0   : > { %p1860_p10 = scmp.lt.s32.totalorder %s1858_s24, %s1852_s8 }
 0x2b2   : > { %p1861_p3 = por %p1860_p10, %p1859_p8 }
 0x2b4   : > { %p1862_p5 = pnand %p1861_p3, %p1855_p7 }
 0x2b6   : > { %1865 = shalt.err (!%p1862_p5)
}
 0x2b7   : > { %s1866_s27 = scalar_lea.hbm %s2388_s14, 1024  ;;  %s1870_s1 = scalar_lea.hbm %s2535_s3, 2048 }
 0x2b8   : > { %p1867_p0 = scmp.ne.s32.totalorder %s2388_s14, %s1866_s27  ;;  %p1871_p13 = scmp.lt.s32.totalorder %s2388_s14, %s2535_s3 }
 0x2b9   : > { %p1872_p6 = scmp.lt.s32.totalorder %s1870_s1, %s1866_s27 }
 0x2ba   : > { %p1868_p12 = pnand %p1867_p0, %p2536_p2 }
 0x2bb   : > { %p1873_p11 = por %p1872_p6, %p1871_p13 }
 0x2bc   : > { %p1869_p4 = pneg %p1868_p12 }
 0x2be   : > { %p1874_p1 = pnand %p1873_p11, %p1869_p4 }
 0x2c0   : > { %1877 = shalt.err (!%p1874_p1)
}
 0x2c1   : > { %s2019_s17 = smov 64   ;;  %s2020_s23 = smov 4  }
 0x2c2   : > { %1567 = dma.vmem_to_hbm [thread:$0]  (%p2536_p2), %s2391_s16, 1024, %s2388_s14, %s2395_s10, %s2019_s17, %s2019_s17, %s2020_s23  }
 0x2c3 PF: > { %p1590_p9 = scmp.ge.s32.totalorder %s2008_s6, 2  ;;  %s1106_s30 = sand.u32 1, %s1956_s18  }
 0x2c4   : > { %p2537_p7 = scmp.ne.s32.totalorder %s2524_s13, 0  ;;  %s1107_s0 = scalar_lea.sflag [#allocation5], %s1106_s30 }
 0x2c6   : > { %p1584_p8 = pnand %p1590_p9, %p2537_p7 }
 0x2c8   : > { %p1585_p10 = pneg %p1584_p8 }
 0x2ca   : > { %1951 = dma.done.wait (%p1585_p10), %s1107_s0, 1024  }
 0x2cb   : > { %1953 = vsyncadd (%p1585_p10), %s1107_s0, 4294966272  ;;  %s25_s6 = sadd.s32 1, %s2008_s6   ;;  %s2539_s7 = sld [smem:[#allocation17_spill]] }
 0x2cc   : > { %p2423_p3 = scmp.ge.s32.totalorder %s25_s6, 6   ;;  %s2540_s23 = sld [smem:[#allocation23_spill]] }
 0x2cd   : > { %s2541_s13 = sld [smem:[#allocation20_spill]]  ;;  %s2544_s18 = smov %s1960_s19 }
 0x2ce   : > { %s2542_s14 = sld [smem:[#allocation21_spill]]  ;;  %s2545_s19 = smov %s1964_s20 }
 0x2cf   : > { %s2543_s30 = sld [smem:[#allocation22_spill]]  ;;  %s2546_s20 = smov %s2254_s9 }
 0x2d0   : > { %s2547_s21 = smov %s1972_s22  ;;  %s2549_s24 = smov %s1984_s25 }
 0x2d1   : > { %s2548_s22 = smov %s2539_s7  ;;  %s2550_s25 = smov %s1988_s26 }
 0x2d2   : > { %s2551_s26 = smov %s2216_s28  ;;  %s2552_s27 = smov %s2000_s29 }
 0x2d3   : > { %s2553_s28 = smov %s2541_s13  ;;  %24 = sbr.rel (!%p2423_p3) target bundleno = 19 (0x13), region = 121 }
 0x2d4   : > { %s2554_s29 = smov %s2542_s14 }
 0x2d8   :  { %1112 = vsyncpa [#allocation4], 1 }
 0x2d9   :  { %1114 = vsyncpa [#allocation4 + $0x1], 1 }
 0x2da   :  { %1115 = vsyncpa [#allocation7], 1 }
 0x2db   :  { %1117 = vsyncpa [#allocation7 + $0x1], 1 }
 0x2dc   :  { %1118 = vsyncpa [#allocation10], 1 }
 0x2dd   :  { %1119 = vsyncpa [#allocation5], 1 }
 0x2de   :  { %1121 = vsyncpa [#allocation5 + $0x1], 1 }

</bundles_post_ra>
